<compile_context>
chip_gen: v7x
topology: tpu7x:2x2x1
jax: 0.10.0
libtpu: 0.0.40
codegen_flags: <defaults>
</compile_context>

<pallas_src>
import functools

import numpy as np
import jax
import jax.numpy as jnp
from jax.experimental import pallas as pl
from jax.experimental.pallas import tpu as pltpu


# ----------------------------------------------------------------------------
# 1) preprocess_image: x * inv_std + shift on a lane-dense flattened layout.
# ----------------------------------------------------------------------------
def _normalize_kernel(inv_std, shift, x_ref, o_ref):
    # inv_std / shift are Python-float tuples (baked constants, one per channel).
    for c in range(len(inv_std)):
        o_ref[0, c] = x_ref[0, c] * inv_std[c] + shift[c]


def normalize_images(images, pixel_mean, pixel_std, target_block_bytes=2 << 20):
    # TODO(synk): in the full model this pass can be folded into the backbone's
    # first conv weights/bias (removes the whole HBM round trip); kept standalone
    # here to mirror the module's preprocess_image.
    B, C, H, W = images.shape
    HW = H * W
    mean = np.asarray(pixel_mean, np.float32)
    std = np.asarray(pixel_std, np.float32)
    inv_std = tuple((1.0 / std).tolist())
    shift = tuple((-mean / std).tolist())

    x = images.reshape(B, C, HW)                      # lane dim = H*W (free reshape)
    LANE_BLOCK = 8 * 128                              # keep chunks (8,128)-aligned
    hw_padded = pl.cdiv(HW, LANE_BLOCK) * LANE_BLOCK
    max_elems = max(LANE_BLOCK,
                    (target_block_bytes // (4 * C)) // LANE_BLOCK * LANE_BLOCK)
    TCHUNK = min(max_elems, hw_padded)                # ~2 MiB per block, VMEM-safe
    grid = (B, pl.cdiv(HW, TCHUNK))                   # ragged last chunk is masked

    out = pl.pallas_call(
        functools.partial(_normalize_kernel, inv_std, shift),
        out_shape=jax.ShapeDtypeStruct((B, C, HW), jnp.float32),
        grid=grid,
        in_specs=[pl.BlockSpec((1, C, TCHUNK), lambda b, j: (b, 0, j))],
        out_specs=pl.BlockSpec((1, C, TCHUNK), lambda b, j: (b, 0, j)),
        compiler_params=pltpu.CompilerParams(
            dimension_semantics=("parallel", "parallel")),
    )(x)
    return out.reshape(B, C, H, W)


# ----------------------------------------------------------------------------
# 2) MaskedBackbone.mask_out_padding: one fused kernel for all feature levels.
#    mask[b, r, c] = (r >= ceil(h_b/stride_l)) | (c >= ceil(w_b/stride_l))
#    Thresholds are scalar ceil-divs on the scalar unit; the body is two iotas,
#    two compares and an OR — no vectorized integer divide.
# ----------------------------------------------------------------------------
def _mask_kernel(N, strides_ref, sizes_ref, o_ref):
    stride = strides_ref[pl.program_id(0)]
    Hmax, Wmax = o_ref.shape[-2], o_ref.shape[-1]
    rows = jax.lax.broadcasted_iota(jnp.int32, (Hmax, Wmax), 0)
    cols = jax.lax.broadcasted_iota(jnp.int32, (Hmax, Wmax), 1)
    for b in range(N):                                # N small & static -> unrolled
        h = sizes_ref[b, 0]
        w = sizes_ref[b, 1]
        vh = (h + stride - 1) // stride               # scalar ceil(h / stride)
        vw = (w + stride - 1) // stride
        o_ref[0, b] = jnp.logical_or(rows >= vh, cols >= vw).astype(jnp.int8)


def mask_out_padding(feature_shapes, image_sizes_hw, strides):
    # TODO(synk): for real workloads this mask is small enough that fusing it
    # into the downstream attention-mask consumer (plain XLA) avoids the launch
    # + HBM round trip entirely; kept as one fused Pallas call per the spec.
    sizes = jnp.asarray(image_sizes_hw, dtype=jnp.int32)        # (N, 2) = (h, w)
    strides_arr = jnp.asarray(strides, dtype=jnp.int32)         # (L,)
    L = len(feature_shapes)
    N = feature_shapes[0][0]
    Hmax = max(s[2] for s in feature_shapes)
    Wmax = max(s[3] for s in feature_shapes)

    m_all = pl.pallas_call(
        functools.partial(_mask_kernel, N),
        out_shape=jax.ShapeDtypeStruct((L, N, Hmax, Wmax), jnp.int8),
        grid=(L,),
        in_specs=[
            pl.BlockSpec(memory_space=pltpu.MemorySpace.SMEM),  # strides (L,)
            pl.BlockSpec(memory_space=pltpu.MemorySpace.SMEM),  # sizes   (N, 2)
        ],
        out_specs=pl.BlockSpec((1, N, Hmax, Wmax), lambda l: (l, 0, 0, 0)),
        compiler_params=pltpu.CompilerParams(dimension_semantics=("parallel",)),
    )(strides_arr, sizes)

    masks = []
    for lvl_idx, (_, _, Hf, Wf) in enumerate(feature_shapes):
        masks.append(m_all[lvl_idx, :, :Hf, :Wf].astype(jnp.bool_))
    return masks


# ----------------------------------------------------------------------------
# 3) Fused DETR head + inference post-process, single lane-dense output slab.
#    slab lanes: [0:K)   raw class logits
#                [K:K+4) sigmoid box (cx, cy, w, h)
#                K+4     score (softmax prob of argmax fg class)
#                K+5     label (as float)
#                [K+6:K+10) unscaled xyxy box
#                rest    zero padding up to 128 lanes
# ----------------------------------------------------------------------------
def _head_post_kernel(K, hs_ref, w_ref, b_ref, o_ref):
    acc = jnp.dot(hs_ref[...], w_ref[...], preferred_element_type=jnp.float32)
    acc = acc + b_ref[...]                                      # (TM, 128)

    cls = acc[:, :K]                                            # raw class logits
    box = jax.nn.sigmoid(acc[:, K:K + 4])                       # sigmoid on 4 lanes only

    # ---- post-process: softmax-max / argmax over foreground classes ----
    m = jnp.max(cls, axis=-1, keepdims=True)
    sum_e = jnp.sum(jnp.exp(cls - m), axis=-1, keepdims=True)
    fg = cls[:, :K - 1]                                         # drop "no-object"
    s = jnp.max(fg, axis=-1, keepdims=True)
    col = jax.lax.broadcasted_iota(jnp.int32, fg.shape, 1)
    label = jnp.min(jnp.where(fg == s, col, K), axis=-1, keepdims=True)
    score = jnp.exp(s - m) / sum_e                              # exact softmax prob

    # ---- cxcywh -> xyxy (unscaled; per-image scaling happens in the wrapper) ----
    cxcy = box[:, 0:2]
    wh = box[:, 2:4]
    xyxy = jnp.concatenate([cxcy - 0.5 * wh, cxcy + 0.5 * wh], axis=1)

    pad = jnp.zeros((acc.shape[0], o_ref.shape[-1] - (K + 10)), jnp.float32)
    o_ref[...] = jnp.concatenate(
        [cls, box, score, label.astype(jnp.float32), xyxy, pad], axis=1)


def build_detr_head_params(w_cls, b_cls, w_box, b_box, nout=128):
    """Precompute the combined (D, 128) weight / (1, 128) bias once at init."""
    D, K = w_cls.shape                                          # K = num_classes + 1
    assert K + 10 <= nout
    w_comb = jnp.concatenate(
        [w_cls, w_box, jnp.zeros((D, nout - K - 4), jnp.float32)], axis=1)
    b_comb = jnp.concatenate(
        [jnp.reshape(b_cls, (1, -1)), jnp.reshape(b_box, (1, -1)),
         jnp.zeros((1, nout - K - 4), jnp.float32)], axis=1)
    return w_comb, b_comb, K


def detr_head_postprocess(hs, w_comb, b_comb, K, image_sizes_hw):
    B, Q, D = hs.shape
    NOUT = w_comb.shape[1]
    M = B * Q
    # TODO(synk): with decoder aux layers, fuse all layers into one call
    # (M = L_dec*B*Q) to better fill the 256-wide MXU on v6e/v7x.
    if M <= 512:
        M_pad = ((M + 7) // 8) * 8
        TM = M_pad                                              # single grid step
    else:
        TM = 512
        M_pad = ((M + TM - 1) // TM) * TM

    x = hs.reshape(M, D).astype(jnp.float32)                    # f32: match torch head
    if M_pad != M:
        x = jnp.pad(x, ((0, M_pad - M), (0, 0)))

    slab = pl.pallas_call(
        functools.partial(_head_post_kernel, K),
        out_shape=jax.ShapeDtypeStruct((M_pad, NOUT), jnp.float32),
        grid=(M_pad // TM,),
        in_specs=[
            pl.BlockSpec((TM, D), lambda i: (i, 0)),
            pl.BlockSpec((D, NOUT), lambda i: (0, 0)),          # weights stay resident
            pl.BlockSpec((1, NOUT), lambda i: (0, 0)),
        ],
        out_specs=pl.BlockSpec((TM, NOUT), lambda i: (i, 0)),   # one lane-dense stream
        compiler_params=pltpu.CompilerParams(dimension_semantics=("parallel",)),
    )(x, w_comb, b_comb)

    slab = slab[:M]
    pred_logits = slab[:, :K].reshape(B, Q, K)
    pred_boxes = slab[:, K:K + 4].reshape(B, Q, 4)
    scores = slab[:, K + 4].reshape(B, Q)
    labels = slab[:, K + 5].astype(jnp.int32).reshape(B, Q)
    boxes_xyxy = slab[:, K + 6:K + 10].reshape(B, Q, 4)

    # tiny per-image (w, h, w, h) scaling in the wrapper (no streamed scale input)
    sizes = jnp.asarray(image_sizes_hw, jnp.float32)            # (B, 2) = (h, w)
    scale = jnp.stack([sizes[:, 1], sizes[:, 0],
                       sizes[:, 1], sizes[:, 0]], axis=1)       # (B, 4)
    boxes_xyxy = boxes_xyxy * scale[:, None, :]
    return pred_logits, pred_boxes, scores, labels, boxes_xyxy


# ----------------------------------------------------------------------------
# Plain-JAX / numpy glue that mirrors the module verbatim
# ----------------------------------------------------------------------------
def preprocess_text_token(qa_embeds, word_len):
    B = len(qa_embeds)
    d = qa_embeds[0].shape[-1]
    padded = np.zeros((B, word_len, d), dtype=np.float32)
    key_padding_mask = np.zeros((B, word_len), dtype=bool)
    for idx, x in enumerate(qa_embeds):
        assert x.shape[0] <= word_len, "sentence is longer than the max word len!"
        padded[idx, :x.shape[0], :x.shape[1]] = x
        key_padding_mask[idx, x.shape[0]:] = True
    return jnp.asarray(padded), jnp.asarray(key_padding_mask)


def exclude_text_token(pred_logits, pred_boxes, num_queries, word_len):
    obj_query_len = num_queries - word_len - 1
    return pred_logits[:, :obj_query_len], pred_boxes[:, :obj_query_len]


# ----------------------------------------------------------------------------
if __name__ == "__main__":
    key = jax.random.PRNGKey(0)
    B, C, H, W = 2, 3, 64, 64
    hidden_dim = 32
    num_classes = 8
    num_queries = 32
    word_len = 8
    strides = [8, 16, 32]                 # MaskedBackbone.strides

    k_img, k_hs, k_wc, k_wb, k_t0, k_t1 = jax.random.split(key, 6)
    images = jax.random.uniform(k_img, (B, C, H, W), jnp.float32) * 255.0
    image_sizes = [(60, 64), (48, 56)]    # true (h, w) of each image before padding

    pixel_mean = np.array([123.675, 116.28, 103.53], np.float32)
    pixel_std = np.array([58.395, 57.12, 57.375], np.float32)

    # preprocess_image (Pallas, baked constants, lane-dense flattened layout)
    images_norm = normalize_images(images, pixel_mean, pixel_std)

    # preprocess_text_token (glue, per-sample ragged padding)
    qa_embeds = [np.asarray(jax.random.normal(k_t0, (5, hidden_dim)), np.float32),
                 np.asarray(jax.random.normal(k_t1, (3, hidden_dim)), np.float32)]
    text_token, text_pad_mask = preprocess_text_token(qa_embeds, word_len)

    # MaskedBackbone.mask_out_padding (single fused Pallas kernel, all levels)
    feature_shapes = [(B, hidden_dim, H // s, W // s) for s in strides]
    masks = mask_out_padding(feature_shapes, image_sizes, strides)

    # TODO(synk): the ResNet backbone, PositionEmbeddingSine and the
    # DeformableTGODTransformer (multi-scale deformable attention) plus the
    # Hungarian matcher / SetCriterion losses are external detectron2/DETR
    # components with no clean Pallas equivalent here; the decoder hidden
    # states `hs` below are a deterministic synthetic stand-in for them.
    hs = jax.random.normal(k_hs, (B, num_queries, hidden_dim), jnp.float32)

    # DeformableTGOD class_embed / bbox_embed parameters (deterministic init)
    scale = 1.0 / np.sqrt(hidden_dim)
    w_cls = jax.random.normal(k_wc, (hidden_dim, num_classes + 1), jnp.float32) * scale
    b_cls = jnp.zeros((1, num_classes + 1), jnp.float32)
    w_box = jax.random.normal(k_wb, (hidden_dim, 4), jnp.float32) * scale
    b_box = jnp.zeros((1, 4), jnp.float32)

    # combined head weights built ONCE (model-init time), not per call
    w_comb, b_comb, K = build_detr_head_params(w_cls, b_cls, w_box, b_box)

    # fused prediction head + inference post-process (Pallas, one MXU pass)
    (pred_logits, pred_boxes,
     scores_all, labels_all, boxes_all) = detr_head_postprocess(
        hs, w_comb, b_comb, K, image_sizes)

    # exclude_text_token (glue slicing): keep num_queries - word_len - 1 queries
    pred_logits, pred_boxes = exclude_text_token(
        pred_logits, pred_boxes, num_queries, word_len)
    Qo = num_queries - word_len - 1
    scores = scores_all[:, :Qo]
    labels = labels_all[:, :Qo]
    boxes_xyxy = boxes_all[:, :Qo]

    jax.block_until_ready((images_norm, text_token, text_pad_mask, masks,
                           pred_logits, pred_boxes, scores, labels, boxes_xyxy))
    print("KERNEL_OK")
</pallas_src>

<mosaic_0001>
module attributes {stable_mosaic.version = 11 : i64} {
  func.func @_normalize_kernel(%arg0: i32, %arg1: i32, %arg2: memref<1x3x4096xf32, #tpu.memory_space<vmem>>, %arg3: memref<1x3x4096xf32, #tpu.memory_space<vmem>>) attributes {dimension_semantics = [#tpu.dimension_semantics<parallel>, #tpu.dimension_semantics<parallel>], iteration_bounds = array<i64: 2, 1>, scalar_prefetch = 0 : i64, scratch_operands = 0 : i64, tpu.core_type = #tpu.core_type<tc>, window_params = [{transform_indices = @transform_0, window_bounds = array<i64: 1, 3, 4096>}, {transform_indices = @transform_1, window_bounds = array<i64: 1, 3, 4096>}]} {
    %c0 = arith.constant 0 : index
    %c0_0 = arith.constant 0 : index
    %c0_1 = arith.constant 0 : index
    %0 = vector.load %arg2[%c0, %c0_0, %c0_1] : memref<1x3x4096xf32, #tpu.memory_space<vmem>>, vector<1x1x4096xf32>
    %1 = vector.shape_cast %0 : vector<1x1x4096xf32> to vector<4096xf32>
    %cst = arith.constant 0.0171247534 : f32
    %2 = vector.broadcast %cst : f32 to vector<4096xf32>
    %3 = arith.mulf %1, %2 : vector<4096xf32>
    %cst_2 = arith.constant -2.11790395 : f32
    %4 = vector.broadcast %cst_2 : f32 to vector<4096xf32>
    %5 = arith.addf %3, %4 : vector<4096xf32>
    %c0_3 = arith.constant 0 : index
    %c0_4 = arith.constant 0 : index
    %c0_5 = arith.constant 0 : index
    %6 = vector.load %arg3[%c0_3, %c0_4, %c0_5] : memref<1x3x4096xf32, #tpu.memory_space<vmem>>, vector<1x1x4096xf32>
    %7 = vector.shape_cast %6 : vector<1x1x4096xf32> to vector<4096xf32>
    %8 = vector.shape_cast %5 : vector<4096xf32> to vector<1x1x4096xf32>
    tpu.vector_store %arg3[%c0_3, %c0_4, %c0_5], %8 {strides = array<i32>} : memref<1x3x4096xf32, #tpu.memory_space<vmem>>, vector<1x1x4096xf32>,
    %c0_6 = arith.constant 0 : index
    %c1 = arith.constant 1 : index
    %c0_7 = arith.constant 0 : index
    %9 = vector.load %arg2[%c0_6, %c1, %c0_7] : memref<1x3x4096xf32, #tpu.memory_space<vmem>>, vector<1x1x4096xf32>
    %10 = vector.shape_cast %9 : vector<1x1x4096xf32> to vector<4096xf32>
    %cst_8 = arith.constant 0.0175070036 : f32
    %11 = vector.broadcast %cst_8 : f32 to vector<4096xf32>
    %12 = arith.mulf %10, %11 : vector<4096xf32>
    %cst_9 = arith.constant -2.03571439 : f32
    %13 = vector.broadcast %cst_9 : f32 to vector<4096xf32>
    %14 = arith.addf %12, %13 : vector<4096xf32>
    %c0_10 = arith.constant 0 : index
    %c1_11 = arith.constant 1 : index
    %c0_12 = arith.constant 0 : index
    %15 = vector.load %arg3[%c0_10, %c1_11, %c0_12] : memref<1x3x4096xf32, #tpu.memory_space<vmem>>, vector<1x1x4096xf32>
    %16 = vector.shape_cast %15 : vector<1x1x4096xf32> to vector<4096xf32>
    %17 = vector.shape_cast %14 : vector<4096xf32> to vector<1x1x4096xf32>
    tpu.vector_store %arg3[%c0_10, %c1_11, %c0_12], %17 {strides = array<i32>} : memref<1x3x4096xf32, #tpu.memory_space<vmem>>, vector<1x1x4096xf32>,
    %c0_13 = arith.constant 0 : index
    %c2 = arith.constant 2 : index
    %c0_14 = arith.constant 0 : index
    %18 = vector.load %arg2[%c0_13, %c2, %c0_14] : memref<1x3x4096xf32, #tpu.memory_space<vmem>>, vector<1x1x4096xf32>
    %19 = vector.shape_cast %18 : vector<1x1x4096xf32> to vector<4096xf32>
    %cst_15 = arith.constant 0.0174291935 : f32
    %20 = vector.broadcast %cst_15 : f32 to vector<4096xf32>
    %21 = arith.mulf %19, %20 : vector<4096xf32>
    %cst_16 = arith.constant -1.80444443 : f32
    %22 = vector.broadcast %cst_16 : f32 to vector<4096xf32>
    %23 = arith.addf %21, %22 : vector<4096xf32>
    %c0_17 = arith.constant 0 : index
    %c2_18 = arith.constant 2 : index
    %c0_19 = arith.constant 0 : index
    %24 = vector.load %arg3[%c0_17, %c2_18, %c0_19] : memref<1x3x4096xf32, #tpu.memory_space<vmem>>, vector<1x1x4096xf32>
    %25 = vector.shape_cast %24 : vector<1x1x4096xf32> to vector<4096xf32>
    %26 = vector.shape_cast %23 : vector<4096xf32> to vector<1x1x4096xf32>
    tpu.vector_store %arg3[%c0_17, %c2_18, %c0_19], %26 {strides = array<i32>} : memref<1x3x4096xf32, #tpu.memory_space<vmem>>, vector<1x1x4096xf32>,
    return
  }
  func.func @transform_0(%arg0: i32, %arg1: i32) -> (i32, i32, i32) {
    %c0_i32 = arith.constant 0 : i32
    %c0_i32_0 = arith.constant 0 : i32
    return %arg0, %c0_i32, %arg1 : i32, i32, i32
  }
  func.func @transform_1(%arg0: i32, %arg1: i32) -> (i32, i32, i32) {
    %c0_i32 = arith.constant 0 : i32
    %c0_i32_0 = arith.constant 0 : i32
    return %arg0, %c0_i32, %arg1 : i32, i32, i32
  }
}

</mosaic_0001>

<bundles_post_ra>
// kernel: tpu_custom_call.1
= control target key start
LH: loop header
LB: loop body
LE: loop exit
PB: predicated region body
PF: predicated region fallthrough
CT: control target
= control target key end

     0   :  { %s406_s6 = smov 0   ;;  %s408_s7 = smov 0   ;;  %s467_s0 = inlined_call_operand.vmem [shape: f32[2,3,4096], index: 0, kind: input, shape index: {}]   ;;  %s468_s1 = inlined_call_operand.vmem [shape: f32[2,3,4096], index: 1, kind: output, shape index: {}]  }
   0x1   :  { %s410_s8 = smov 0  }
   0x2 LB: > { %s23_s9 = sadd.s32 1, %s390_s7  ;;  %p317_p0 = scmp.ge.s32.totalorder %s394_s8, 1  ;;  %s394_s8 = sphi %s410_s8, %s11_s8   ;;  %s390_s7 = sphi %s408_s7, %s470_s7   ;;  %s386_s6 = sphi %s406_s6, %s469_s6  }
   0x3   : > { %p25_p1 = scmp.ge.s32.totalorder %s23_s9, 2  ;;  %p108_p2 = scmp.lt.s32.totalorder %s394_s8, 3 }
   0x5   : > { %s472_s9 = smov (%p25_p1, %s23_s9), 0  ;;  %p109_p3 = pnand %p317_p0, %p108_p2 }
   0x6   : > { %p137_p4 = scmp.lt.s32.totalorder (!%p109_p3), %s386_s6, 1 }
   0x7   : > { %112 = sbr.rel (%p109_p3) target bundleno = 35 (0x23), region = 24 }
   0xe   : > { %s474_s6 = smov (!%p137_p4, %s386_s6), 1 }
   0xf   : > { %s346_s10 = sshll.u32 %s474_s6, 7 }
  0x10   : > { %s427_s13 = scalar_lea.vmem %s467_s0, %s346_s10  ;;  %s435_s16 = scalar_lea.vmem %s468_s1, %s346_s10 }
  0x11   : > { %v156_v0 = vld [vmem:[%s427_s13] ss:$4 sm:$0xff]  ;;  %v328_v7 = vld [vmem:[%s427_s13 + $0x1] ss:$4 sm:$0xff]  ;;  %v336_v17 = vld [vmem:[%s427_s13 + $0x2] ss:$4 sm:$0xff] }
  0x12   : > { %v322_v1 = vld [vmem:[%s427_s13 + $0x20] ss:$4 sm:$0xff]  ;;  %v163_v3 = vmul.f32 0.017124753, %v156_v0  ;;  %v329_v8 = vld [vmem:[%s427_s13 + $0x21] ss:$4 sm:$0xff] }
  0x13   : > { %v323_v2 = vld [vmem:[%s427_s13 + $0x40] ss:$4 sm:$0xff]  ;;  %v164_v4 = vmul.f32 0.017124753, %v322_v1  ;;  %v186_v13 = vmul.f32 0.017507004, %v328_v7 }
  0x14   : > { %v165_v5 = vmul.f32 0.017124753, %v323_v2  ;;  %v324_v6 = vld [vmem:[%s427_s13 + $0x60] ss:$4 sm:$0xff]  ;;  %v167_v9 = vadd.f32 -2.117904, %v163_v3 }
  0x15   : > { %v168_v10 = vadd.f32 -2.117904, %v164_v4  ;;  %v166_v12 = vmul.f32 0.017124753, %v324_v6  ;;  %v187_v14 = vmul.f32 0.017507004, %v329_v8 }
  0x16   : > { %v169_v11 = vadd.f32 -2.117904, %v165_v5  ;;  %171 = vst [vmem:[%s435_s16] ss:$4 sm:$0xff] %v167_v9  ;;  %v330_v15 = vld [vmem:[%s427_s13 + $0x41] ss:$4 sm:$0xff] }
  0x17   : > { %325 = vst [vmem:[%s435_s16 + $0x20] ss:$4 sm:$0xff] %v168_v10  ;;  %v331_v16 = vld [vmem:[%s427_s13 + $0x61] ss:$4 sm:$0xff]  ;;  %v170_v18 = vadd.f32 -2.117904, %v166_v12 }
  0x18   : > { %326 = vst [vmem:[%s435_s16 + $0x40] ss:$4 sm:$0xff] %v169_v11  ;;  %v190_v19 = vadd.f32 -2.0357144, %v186_v13  ;;  %v191_v20 = vadd.f32 -2.0357144, %v187_v14 }
  0x19   : > { %v188_v21 = vmul.f32 0.017507004, %v330_v15  ;;  %v189_v22 = vmul.f32 0.017507004, %v331_v16  ;;  %v210_v23 = vmul.f32 0.017429193, %v336_v17 }
  0x1a   : > { %327 = vst [vmem:[%s435_s16 + $0x60] ss:$4 sm:$0xff] %v170_v18  ;;  %332 = vst [vmem:[%s435_s16 + $0x1] ss:$4 sm:$0xff] %v190_v19  ;;  %v337_v24 = vld [vmem:[%s427_s13 + $0x22] ss:$4 sm:$0xff] }
  0x1b   : > { %333 = vst [vmem:[%s435_s16 + $0x21] ss:$4 sm:$0xff] %v191_v20  ;;  %v338_v25 = vld [vmem:[%s427_s13 + $0x42] ss:$4 sm:$0xff]  ;;  %v192_v27 = vadd.f32 -2.0357144, %v188_v21 }
  0x1c   : > { %v339_v26 = vld [vmem:[%s427_s13 + $0x62] ss:$4 sm:$0xff]  ;;  %v193_v28 = vadd.f32 -2.0357144, %v189_v22  ;;  %v214_v29 = vadd.f32 -1.8044444, %v210_v23 }
  0x1d   : > { %v211_v30 = vmul.f32 0.017429193, %v337_v24  ;;  %v212_v31 = vmul.f32 0.017429193, %v338_v25  ;;  %v213_v32 = vmul.f32 0.017429193, %v339_v26 }
  0x1e   : > { %334 = vst [vmem:[%s435_s16 + $0x41] ss:$4 sm:$0xff] %v192_v27  ;;  %335 = vst [vmem:[%s435_s16 + $0x61] ss:$4 sm:$0xff] %v193_v28 }
  0x1f   : > { %340 = vst [vmem:[%s435_s16 + $0x2] ss:$4 sm:$0xff] %v214_v29  ;;  %v215_v33 = vadd.f32 -1.8044444, %v211_v30  ;;  %v216_v34 = vadd.f32 -1.8044444, %v212_v31 }
  0x20   : > { %v217_v35 = vadd.f32 -1.8044444, %v213_v32 }
  0x21   : > { %341 = vst [vmem:[%s435_s16 + $0x22] ss:$4 sm:$0xff] %v215_v33  ;;  %342 = vst [vmem:[%s435_s16 + $0x42] ss:$4 sm:$0xff] %v216_v34 }
  0x22   : > { %343 = vst [vmem:[%s435_s16 + $0x62] ss:$4 sm:$0xff] %v217_v35 }
  0x23 PF: > { %s11_s8 = sadd.s32 1, %s394_s8   ;;  %s469_s6 = smov %s390_s7 }
  0x24   : > { %p8_p5 = scmp.ge.s32.totalorder %s11_s8, 4   ;;  %s470_s7 = smov %s472_s9 }
  0x26   :  { %10 = sbr.rel (!%p8_p5) target bundleno = 2 (0x2), region = 76 }

</bundles_post_ra>
